<compile_context>
chip_gen: v6e
topology: v6e:2x2x1
jax: 0.10.0
libtpu: 0.0.40
codegen_flags: <defaults>
</compile_context>

<pallas_src>
import jax
import jax.numpy as jnp
from jax import lax
from jax.experimental import pallas as pl
from jax.experimental.pallas import tpu as pltpu


# ============================================================================
# Pallas kernels: MXU matmul (bf16 x bf16 -> f32 accumulation) + fused bias
# ============================================================================
def _mm_bias_kernel(a_ref, b_ref, bias_ref, o_ref):
    """Single-step matmul: the whole K reduction lives in one block."""
    acc = jnp.dot(a_ref[...], b_ref[...], preferred_element_type=jnp.float32)
    o_ref[...] = (acc + bias_ref[...]).astype(o_ref.dtype)


def _mm_bias_kernel_ksplit(a_ref, b_ref, bias_ref, o_ref, acc_ref):
    """Fallback for very large K: grid axis over K with a f32 accumulator."""
    @pl.when(pl.program_id(2) == 0)
    def _():
        acc_ref[...] = jnp.zeros_like(acc_ref)

    acc_ref[...] += jnp.dot(a_ref[...], b_ref[...],
                            preferred_element_type=jnp.float32)

    @pl.when(pl.program_id(2) == pl.num_programs(2) - 1)
    def _():
        o_ref[...] = (acc_ref[...] + bias_ref[...]).astype(o_ref.dtype)


def _bmm_bias_kernel(a_ref, b_ref, bias_ref, o_ref):
    """Batched matmul (grid axis over the batch/phase dim), fused bias."""
    acc = jnp.dot(a_ref[0], b_ref[0], preferred_element_type=jnp.float32)
    o_ref[0] = (acc + bias_ref[...]).astype(o_ref.dtype)


def _round_up(x, m):
    return (x + m - 1) // m * m


def pallas_matmul_bias(a, b, bias, *, out_dtype=jnp.bfloat16):
    """(M, K) @ (K, N) + bias[N] on the MXU; bf16 inputs, f32 accumulation."""
    M, K = a.shape
    K2, N = b.shape
    assert K == K2 and bias.shape == (N,)

    a = a.astype(jnp.bfloat16)
    b = b.astype(jnp.bfloat16)
    bias2 = bias.astype(jnp.float32).reshape(1, N)

    # ---- shape-adaptive tiling --------------------------------------------
    # K: whole reduction in one block when it fits comfortably in VMEM (true
    #    for every mpinet layer at the demo shapes) -> no K grid axis, no
    #    scratch, no K padding.
    if K <= 2048:
        tk, Kp = K, K
    else:                                     # generic fallback, not hit here
        tk = 1024
        Kp = _round_up(K, tk)
    grid_k = Kp // tk

    # N: exact N when small (lane dim == full array dim, so no 128-multiple
    #    constraint and no padding of B / bias / output); 256-wide tiles
    #    otherwise.
    if N <= 512:
        tn, Np = N, N
    else:
        tn = 256
        Np = _round_up(N, tn)
    grid_n = Np // tn

    # M: single block for the small matmuls in this network (per-step overhead
    #    dominates); 256-row tiles for large M.
    if M <= 512:
        tm, Mp = M, M
    else:
        tm = 256
        Mp = _round_up(M, tm)
    grid_m = Mp // tm

    ap = a if (Mp == M and Kp == K) else jnp.pad(a, ((0, Mp - M), (0, Kp - K)))
    bp = b if (Kp == K and Np == N) else jnp.pad(b, ((0, Kp - K), (0, Np - N)))
    biasp = bias2 if Np == N else jnp.pad(bias2, ((0, 0), (0, Np - N)))

    cost = pl.CostEstimate(
        flops=2 * M * K * N,
        transcendentals=0,
        bytes_accessed=int(2 * M * K + 2 * K * N + 4 * N
                           + M * N * jnp.dtype(out_dtype).itemsize),
    )

    if grid_k == 1:
        kernel = _mm_bias_kernel
        grid = (grid_m, grid_n)
        in_specs = [
            pl.BlockSpec((tm, Kp), lambda i, j: (i, 0)),
            pl.BlockSpec((Kp, tn), lambda i, j: (0, j)),
            pl.BlockSpec((1, tn), lambda i, j: (0, j)),
        ]
        out_spec = pl.BlockSpec((tm, tn), lambda i, j: (i, j))
        scratch = []
        dim_sem = ("parallel", "parallel")
    else:
        kernel = _mm_bias_kernel_ksplit
        grid = (grid_m, grid_n, grid_k)
        in_specs = [
            pl.BlockSpec((tm, tk), lambda i, j, k: (i, k)),
            pl.BlockSpec((tk, tn), lambda i, j, k: (k, j)),
            pl.BlockSpec((1, tn), lambda i, j, k: (0, j)),
        ]
        out_spec = pl.BlockSpec((tm, tn), lambda i, j, k: (i, j))
        scratch = [pltpu.VMEM((tm, tn), jnp.float32)]
        dim_sem = ("parallel", "parallel", "arbitrary")

    out = pl.pallas_call(
        kernel,
        out_shape=jax.ShapeDtypeStruct((Mp, Np), out_dtype),
        grid_spec=pltpu.PrefetchScalarGridSpec(
            num_scalar_prefetch=0,
            grid=grid,
            in_specs=in_specs,
            out_specs=out_spec,
            scratch_shapes=scratch,
        ),
        compiler_params=pltpu.CompilerParams(dimension_semantics=dim_sem),
        cost_estimate=cost,
    )(ap, bp, biasp)

    if Mp != M or Np != N:
        out = out[:M, :N]
    return out


def pallas_batched_matmul_bias(a, b, bias, *, out_dtype=jnp.bfloat16):
    """(P, M, K) @ (P, K, N) + bias[N]: one pallas_call, grid over P."""
    P, M, K = a.shape
    P2, K2, N = b.shape
    assert P == P2 and K == K2 and bias.shape == (N,)

    a = a.astype(jnp.bfloat16)
    b = b.astype(jnp.bfloat16)
    bias2 = bias.astype(jnp.float32).reshape(1, N)

    cost = pl.CostEstimate(
        flops=2 * P * M * K * N,
        transcendentals=0,
        bytes_accessed=int(2 * P * M * K + 2 * P * K * N + 4 * N
                           + P * M * N * jnp.dtype(out_dtype).itemsize),
    )

    return pl.pallas_call(
        _bmm_bias_kernel,
        out_shape=jax.ShapeDtypeStruct((P, M, N), out_dtype),
        grid_spec=pltpu.PrefetchScalarGridSpec(
            num_scalar_prefetch=0,
            grid=(P,),
            in_specs=[
                pl.BlockSpec((1, M, K), lambda p: (p, 0, 0)),
                pl.BlockSpec((1, K, N), lambda p: (p, 0, 0)),
                pl.BlockSpec((1, N), lambda p: (0, 0)),
            ],
            out_specs=pl.BlockSpec((1, M, N), lambda p: (p, 0, 0)),
        ),
        compiler_params=pltpu.CompilerParams(
            dimension_semantics=("parallel",)),
        cost_estimate=cost,
    )(a, b, bias2)


# ============================================================================
# Conv2d / ConvTranspose2d built on the Pallas matmuls
# ============================================================================
def _im2col(x, kh, kw, stride, dilation, padding):
    """NHWC -> (N*Ho*Wo, kh*kw*C) patch matrix (stays in the input dtype)."""
    N, H, W, C = x.shape
    if padding:
        x = jnp.pad(x, ((0, 0), (padding, padding), (padding, padding), (0, 0)))
    Hp, Wp = H + 2 * padding, W + 2 * padding
    Ho = (Hp - dilation * (kh - 1) - 1) // stride + 1
    Wo = (Wp - dilation * (kw - 1) - 1) // stride + 1
    cols = []
    for i in range(kh):
        for j in range(kw):
            patch = lax.slice(
                x,
                (0, i * dilation, j * dilation, 0),
                (N, i * dilation + (Ho - 1) * stride + 1,
                 j * dilation + (Wo - 1) * stride + 1, C),
                (1, stride, stride, 1))
            cols.append(patch)                        # (N, Ho, Wo, C)
    col = jnp.stack(cols, axis=3)                     # (N, Ho, Wo, kh*kw, C)
    return col.reshape(N * Ho * Wo, kh * kw * C), (N, Ho, Wo)


def conv2d(x, w_hwio, b, *, stride=1, dilation=1, padding=0,
           out_dtype=jnp.bfloat16):
    """x: NHWC, w_hwio: (KH, KW, Cin, Cout), b: (Cout,)."""
    KH, KW, Cin, Cout = w_hwio.shape
    # TODO(synk): fuse this patch extraction into the Pallas kernel (tap loop
    # over a VMEM-resident padded input) to kill the KH*KW x HBM replication.
    col, (N, Ho, Wo) = _im2col(x.astype(jnp.bfloat16), KH, KW,
                               stride, dilation, padding)
    wmat = w_hwio.astype(jnp.bfloat16).reshape(KH * KW * Cin, Cout)
    out = pallas_matmul_bias(col, wmat, b, out_dtype=out_dtype)
    return out.reshape(N, Ho, Wo, Cout)


# Sub-pixel decomposition of ConvTranspose2d(kernel=4, stride=2, padding=1):
# output phase (py, px) in {0,1}^2 is a stride-1 2x2 conv of the UN-dilated
# input with a fixed sub-kernel -> 4x fewer MXU FLOPs than the zero-dilated
# equivalent conv and no structural zeros in the im2col matrix.  All four
# phase matmuls are fused into a single pallas_call (grid over the phase).
_PHASE_TAPS = ((3, 1), (2, 0))      # kernel-tap indices for even / odd phase


def conv_transpose2d_s2k4p1(x, w_pt, b, *, out_dtype=jnp.bfloat16):
    """x: NHWC, w_pt: PyTorch ConvTranspose2d layout (Cin, Cout, 4, 4)."""
    Cin, Cout, KH, KW = w_pt.shape
    assert (KH, KW) == (4, 4)
    N, H, W, _ = x.shape
    xb = x.astype(jnp.bfloat16)
    wb = w_pt.astype(jnp.bfloat16)
    xp = jnp.pad(xb, ((0, 0), (1, 1), (1, 1), (0, 0)))
    M = N * H * W
    K = 4 * Cin

    cols, wmats = [], []
    for py in (0, 1):
        ty = _PHASE_TAPS[py]
        for px in (0, 1):
            tx = _PHASE_TAPS[px]
            x_ph = xp[:, py:py + H + 1, px:px + W + 1, :]
            col, _ = _im2col(x_ph, 2, 2, 1, 1, 0)          # (M, 4*Cin)
            cols.append(col)
            # w_sub[a, bb, ci, co] = w_pt[ci, co, ty[a], tx[bb]]  (HWIO)
            w_sub = jnp.stack(
                [jnp.stack([wb[:, :, ty[a], tx[bb]] for bb in range(2)],
                           axis=0) for a in range(2)], axis=0)  # (2,2,Cin,Cout)
            wmats.append(w_sub.reshape(4 * Cin, Cout))

    a_ph = jnp.stack(cols, axis=0)      # (4, M, 4*Cin)
    b_ph = jnp.stack(wmats, axis=0)     # (4, 4*Cin, Cout)

    # One batched pallas_call when the whole per-phase problem fits easily in
    # VMEM (always true at the demo shapes); otherwise 4 tiled matmuls.
    if (M * K + K * Cout + M * Cout) * 2 <= 2 * 1024 * 1024:
        out_ph = pallas_batched_matmul_bias(a_ph, b_ph, b, out_dtype=out_dtype)
    else:
        out_ph = jnp.stack(
            [pallas_matmul_bias(a_ph[i], b_ph[i], b, out_dtype=out_dtype)
             for i in range(4)], axis=0)

    # out[:, 2m+py, 2k+px, :] = phase[py][px][:, m, k, :]  (pixel shuffle)
    out = out_ph.reshape(2, 2, N, H, W, Cout)
    out = jnp.transpose(out, (2, 3, 0, 4, 1, 5))       # (N, H, 2, W, 2, C)
    return out.reshape(N, 2 * H, 2 * W, Cout)


# ============================================================================
# mpinet: parameters + forward
# ============================================================================
def _layer_cfg(in_channels, out_channels, sf):
    # name, kind, Cin, Cout, kernel, stride, dilation, padding
    return [
        ("conv11", "conv",  in_channels, sf * 2,  3, 1, 1, 1),
        ("conv12", "conv",  sf * 2,      sf * 4,  4, 2, 1, 1),
        ("conv21", "conv",  sf * 4,      sf * 4,  3, 1, 1, 1),
        ("conv22", "conv",  sf * 4,      sf * 8,  4, 2, 1, 1),
        ("conv31", "conv",  sf * 8,      sf * 8,  3, 1, 1, 1),
        ("conv32", "conv",  sf * 8,      sf * 8,  3, 1, 1, 1),
        ("conv33", "conv",  sf * 8,      sf * 16, 4, 2, 1, 1),
        ("conv41", "conv",  sf * 16,     sf * 16, 3, 1, 2, 2),
        ("conv42", "conv",  sf * 16,     sf * 16, 3, 1, 2, 2),
        ("conv43", "conv",  sf * 16,     sf * 16, 3, 1, 2, 2),
        ("conv51", "convT", sf * 32,     sf * 8,  4, 2, 1, 1),
        ("conv52", "conv",  sf * 8,      sf * 8,  3, 1, 1, 1),
        ("conv53", "conv",  sf * 8,      sf * 8,  3, 1, 1, 1),
        ("conv61", "convT", sf * 16,     sf * 4,  4, 2, 1, 1),
        ("conv62", "conv",  sf * 4,      sf * 4,  3, 1, 1, 1),
        ("conv71", "convT", sf * 8,      sf * 2,  4, 2, 1, 1),
        ("conv72", "conv",  sf * 2,      sf * 2,  3, 1, 1, 1),
        ("conv73", "conv",  sf * 2,      out_channels, 1, 1, 1, 0),
    ]


def init_params(key, in_channels, out_channels, sf):
    cfg = _layer_cfg(in_channels, out_channels, sf)
    params, hp = {}, {}
    keys = jax.random.split(key, len(cfg))
    for k, (name, kind, cin, cout, ksz, stride, dil, pad) in zip(keys, cfg):
        if kind == "conv":
            wshape = (cout, cin, ksz, ksz)        # PyTorch Conv2d layout
            fan_in = cin * ksz * ksz
        else:
            wshape = (cin, cout, ksz, ksz)        # PyTorch ConvTranspose2d
            fan_in = cout * ksz * ksz
        # kaiming-normal style init, zero bias (as in the module)
        w = jax.random.normal(k, wshape, jnp.float32) * jnp.sqrt(2.0 / fan_in)
        params[name] = {"w": w, "b": jnp.zeros((cout,), jnp.float32)}
        hp[name] = (kind, stride, dil, pad)
    return params, hp


def _mpinet_chain(apply_fn, x_nhwc):
    out1_1 = apply_fn("conv11", x_nhwc)
    out1_2 = apply_fn("conv12", out1_1)
    out2_1 = apply_fn("conv21", out1_2)
    out2_2 = apply_fn("conv22", out2_1)
    out3_1 = apply_fn("conv31", out2_2)
    out3_2 = apply_fn("conv32", out3_1)
    out3_3 = apply_fn("conv33", out3_2)
    out4_1 = apply_fn("conv41", out3_3)
    out4_2 = apply_fn("conv42", out4_1)
    out4_3 = apply_fn("conv43", out4_2)
    out5_1 = apply_fn("conv51", jnp.concatenate((out4_3, out3_3), axis=-1))
    out5_2 = apply_fn("conv52", out5_1)
    out5_3 = apply_fn("conv53", out5_2)
    out6_1 = apply_fn("conv61", jnp.concatenate((out5_3, out2_2), axis=-1))
    out6_2 = apply_fn("conv62", out6_1)
    out7_1 = apply_fn("conv71", jnp.concatenate((out6_2, out1_2), axis=-1))
    out7_2 = apply_fn("conv72", out7_1)
    out7_3 = apply_fn("conv73", out7_2)
    return out7_3, out7_2


# The two returned tensors come straight out of the f32 accumulator.
_F32_OUT_LAYERS = frozenset({"conv72", "conv73"})


def mpinet_forward(params, hp, x_nchw):
    """Pallas-backed forward.  NCHW in / (NCHW, NCHW) out, like the module."""
    x = jnp.transpose(x_nchw, (0, 2, 3, 1))             # NCHW -> NHWC

    def apply_fn(name, y):
        kind, s, d, p = hp[name]
        w, b = params[name]["w"], params[name]["b"]
        odt = jnp.float32 if name in _F32_OUT_LAYERS else jnp.bfloat16
        if kind == "conv":
            w_hwio = jnp.transpose(w, (2, 3, 1, 0))     # OIHW -> HWIO
            return conv2d(y, w_hwio, b, stride=s, dilation=d, padding=p,
                          out_dtype=odt)
        return conv_transpose2d_s2k4p1(y, w, b, out_dtype=odt)

    out7_3, out7_2 = _mpinet_chain(apply_fn, x)
    return (jnp.transpose(out7_3, (0, 3, 1, 2)).astype(jnp.float32),
            jnp.transpose(out7_2, (0, 3, 1, 2)).astype(jnp.float32))


# ----------------------------------------------------------------------------
# Light per-op numerical self-checks against XLA (same bf16-in / f32-accum
# quantization, so only summation-order noise differs).
# ----------------------------------------------------------------------------
def _selfcheck(key):
    kx, kw, kb = jax.random.split(key, 3)

    # -- Conv2d path (3x3, stride 1, pad 1) ----------------------------------
    x = jax.random.normal(kx, (2, 8, 8, 16), jnp.float32)
    w = jax.random.normal(kw, (3, 3, 16, 32), jnp.float32) * 0.2
    b = jax.random.normal(kb, (32,), jnp.float32) * 0.1
    got = conv2d(x, w, b, stride=1, dilation=1, padding=1,
                 out_dtype=jnp.float32)
    ref = lax.conv_general_dilated(
        x.astype(jnp.bfloat16), w.astype(jnp.bfloat16),
        window_strides=(1, 1), padding=[(1, 1), (1, 1)],
        dimension_numbers=("NHWC", "HWIO", "NHWC"),
        preferred_element_type=jnp.float32) + b
    err = float(jnp.max(jnp.abs(got - ref)))
    scale = float(jnp.max(jnp.abs(ref))) + 1e-6
    assert err <= 2e-2 * scale, ("conv2d mismatch vs XLA", err, scale)

    # -- ConvTranspose2d path (k=4, s=2, p=1) --------------------------------
    wt = jax.random.normal(kw, (16, 8, 4, 4), jnp.float32) * 0.2  # (Cin,Cout,4,4)
    bt = jax.random.normal(kb, (8,), jnp.float32) * 0.1
    got_t = conv_transpose2d_s2k4p1(x, wt, bt, out_dtype=jnp.float32)
    w_hwio = jnp.transpose(wt[:, :, ::-1, ::-1], (2, 3, 0, 1)).astype(jnp.bfloat16)
    ref_t = lax.conv_general_dilated(
        x.astype(jnp.bfloat16), w_hwio,
        window_strides=(1, 1), padding=[(2, 2), (2, 2)],
        lhs_dilation=(2, 2),
        dimension_numbers=("NHWC", "HWIO", "NHWC"),
        preferred_element_type=jnp.float32) + bt
    err = float(jnp.max(jnp.abs(got_t - ref_t)))
    scale = float(jnp.max(jnp.abs(ref_t))) + 1e-6
    assert err <= 2e-2 * scale, ("conv_transpose mismatch vs XLA", err, scale)


if __name__ == "__main__":
    # Small, module-consistent shapes: batch=2, in_channels=6, out_channels=4,
    # start_filts=8, spatial 16x16 (divisible by 8 for the 3 stride-2 stages).
    B, IC, OC, SF, HW = 2, 6, 4, 8, 16

    key = jax.random.PRNGKey(0)
    kx, kp, kc = jax.random.split(key, 3)

    # Per-op correctness checks of the Pallas conv / conv-transpose lowering.
    _selfcheck(kc)

    x1 = jax.random.normal(kx, (B, IC, HW, HW), jnp.float32)   # NCHW input
    params, hp = init_params(kp, IC, OC, SF)

    fwd = jax.jit(lambda p, x: mpinet_forward(p, hp, x))
    out7_3, out7_2 = fwd(params, x1)
    jax.block_until_ready((out7_3, out7_2))

    assert out7_3.shape == (B, OC, HW, HW), out7_3.shape
    assert out7_2.shape == (B, SF * 2, HW, HW), out7_2.shape
    assert bool(jnp.isfinite(out7_3).all()) and bool(jnp.isfinite(out7_2).all())

    print("KERNEL_OK")
</pallas_src>

<mosaic_0001>
module attributes {stable_mosaic.version = 11 : i64} {
  func.func @_mm_bias_kernel(%arg0: i32, %arg1: i32, %arg2: memref<128x144xbf16, #tpu.memory_space<vmem>>, %arg3: memref<144x32xbf16, #tpu.memory_space<vmem>>, %arg4: memref<1x32xf32, #tpu.memory_space<vmem>>, %arg5: memref<128x32xf32, #tpu.memory_space<vmem>>) attributes {dimension_semantics = [#tpu.dimension_semantics<parallel>, #tpu.dimension_semantics<parallel>], iteration_bounds = array<i64: 1, 1>, scalar_prefetch = 0 : i64, scratch_operands = 0 : i64, tpu.core_type = #tpu.core_type<tc>, window_params = [{transform_indices = @transform_0, window_bounds = array<i64: 128, 144>}, {transform_indices = @transform_1, window_bounds = array<i64: 144, 32>}, {transform_indices = @transform_2, window_bounds = array<i64: 1, 32>}, {transform_indices = @transform_3, window_bounds = array<i64: 128, 32>}]} {
    %c0 = arith.constant 0 : index
    %c0_0 = arith.constant 0 : index
    %0 = vector.load %arg2[%c0, %c0_0] : memref<128x144xbf16, #tpu.memory_space<vmem>>, vector<128x144xbf16>
    %c0_1 = arith.constant 0 : index
    %c0_2 = arith.constant 0 : index
    %1 = vector.load %arg3[%c0_1, %c0_2] : memref<144x32xbf16, #tpu.memory_space<vmem>>, vector<144x32xbf16>
    %cst = arith.constant dense<0.000000e+00> : vector<128x32xf32>
    %2 = tpu.matmul %0, %1, %cst {dimension_numbers = #tpu.dot_dimension_numbers<[1], [0], [0], [1], [0, 0, 1, 1], [], []>} : vector<128x144xbf16>, vector<144x32xbf16>, vector<128x32xf32> -> vector<128x32xf32>
    %c0_3 = arith.constant 0 : index
    %c0_4 = arith.constant 0 : index
    %3 = vector.load %arg4[%c0_3, %c0_4] : memref<1x32xf32, #tpu.memory_space<vmem>>, vector<1x32xf32>
    %4 = vector.broadcast %3 : vector<1x32xf32> to vector<128x32xf32>
    %5 = arith.addf %2, %4 : vector<128x32xf32>
    %c0_5 = arith.constant 0 : index
    %c0_6 = arith.constant 0 : index
    %6 = vector.load %arg5[%c0_5, %c0_6] : memref<128x32xf32, #tpu.memory_space<vmem>>, vector<128x32xf32>
    tpu.vector_store %arg5[%c0_5, %c0_6], %5 {strides = array<i32>} : memref<128x32xf32, #tpu.memory_space<vmem>>, vector<128x32xf32>,
    return
  }
  func.func @transform_0(%arg0: i32, %arg1: i32) -> (i32, i32) {
    %c0_i32 = arith.constant 0 : i32
    %c0_i32_0 = arith.constant 0 : i32
    return %arg0, %c0_i32 : i32, i32
  }
  func.func @transform_1(%arg0: i32, %arg1: i32) -> (i32, i32) {
    %c0_i32 = arith.constant 0 : i32
    %c0_i32_0 = arith.constant 0 : i32
    return %c0_i32, %arg1 : i32, i32
  }
  func.func @transform_2(%arg0: i32, %arg1: i32) -> (i32, i32) {
    %c0_i32 = arith.constant 0 : i32
    %c0_i32_0 = arith.constant 0 : i32
    return %c0_i32, %arg1 : i32, i32
  }
  func.func @transform_3(%arg0: i32, %arg1: i32) -> (i32, i32) {
    %c0_i32 = arith.constant 0 : i32
    return %arg0, %arg1 : i32, i32
  }
}

</mosaic_0001>

<bundles_post_ra>
// kernel: tpu_custom_call.1
= control target key start
LH: loop header
LB: loop body
LE: loop exit
PB: predicated region body
PF: predicated region fallthrough
CT: control target
= control target key end

     0   :  { %v411_v0 = vmov 0   ;;  %vm182_vm0 = vcmask 130048   ;;  %vm304_vm1 = vcmask 261120   ;;  %s582_s1 = inlined_call_operand.vmem [shape: bf16[144,32], index: 1, kind: input, shape index: {}]   ;;  %s583_s0 = inlined_call_operand.vmem [shape: bf16[128,144], index: 0, kind: input, shape index: {}]   ;;  %s584_s2 = inlined_call_operand.vmem [shape: f32[1,32], index: 2, kind: input, shape index: {}]   ;;  %s585_s3 = inlined_call_operand.vmem [shape: f32[128,32], index: 3, kind: output, shape index: {}]  }
   0x1   :  { %207 = vmatprep.subr.bf16.mxu0 %v411_v0  ;;  %359 = vmatprep.subr.bf16.mxu1 %v411_v0  ;;  %v378_v1 = vld [vmem:[%s582_s1 + $0x38] sm:$0xff]   ;;  %v379_v2 = vld [vmem:[%s582_s1 + $0x30] sm:$0xff]   ;;  %v380_v3 = vld [vmem:[%s582_s1 + $0x28] sm:$0xff]  }
   0x2   :  { %208 = vmatpush1.bf16.msra.mxu0 %v378_v1  ;;  %368 = vmatpush1.bf16.msra.mxu1 %v378_v1  ;;  %v381_v4 = vld [vmem:[%s582_s1 + $0x20] sm:$0xff]   ;;  %v382_v7 = vld [vmem:[%s582_s1 + $0x18] sm:$0xff]   ;;  %v383_v8 = vld [vmem:[%s582_s1 + $0x10] sm:$0xff]  }
   0x3   :  { %209 = vmatprep.subr.bf16.mxu0 %v411_v0  ;;  %360 = vmatprep.subr.bf16.mxu1 %v411_v0  ;;  %v389_v5 = vld [vmem:[%s583_s0 + $0x4] ss:$8 sps:$4 sm:$0xff]   ;;  %v387_v12 = vld [vmem:[%s583_s0] ss:$8 sps:$4 sm:$0xff]   ;;  %v393_v14 = vld [vmem:[%s583_s0 + $0x14] ss:$8 sps:$4 sm:$0xff]  }
   0x4   :  { %v392_v6 = vld [vmem:[%s583_s0 + $0x44] ss:$8 sps:$4 sm:$0xff]   ;;  %351 = vmatprep.mubr.msk.bf16.mxu0 %vm182_vm0, %v389_v5  ;;  %v390_v13 = vld [vmem:[%s583_s0 + $0x40] ss:$8 sps:$4 sm:$0xff]   ;;  %v395_v15 = vld [vmem:[%s583_s0 + $0x54] ss:$8 sps:$4 sm:$0xff]  }
   0x5   :  { %355 = vmatprep.mubr.msk.bf16.mxu1 %vm182_vm0, %v392_v6  ;;  %v384_v9 = vld [vmem:[%s582_s1 + $0x8] sm:$0xff]   ;;  %v385_v10 = vld [vmem:[%s582_s1] sm:$0xff]   ;;  %v397_v16 = vld [vmem:[%s583_s0 + $0x10] ss:$8 sps:$4 sm:$0xff]  }
   0x6   :  { %210 = vmatpush1.bf16.msra.mxu0 %v379_v2  ;;  %369 = vmatpush1.bf16.msra.mxu1 %v379_v2  ;;  %v386_v11 = vld [vmem:[%s582_s1 + $0x40] sm:$0xff]   ;;  %v398_v17 = vld [vmem:[%s583_s0 + $0x50] ss:$8 sps:$4 sm:$0xff]   ;;  %v405_v22 = vld [vmem:[%s583_s0 + $0x34] ss:$8 sps:$4 sm:$0xff]  }
   0x7   :  { %211 = vmatprep.subr.bf16.mxu0 %v411_v0  ;;  %361 = vmatprep.subr.bf16.mxu1 %v411_v0  ;;  %v399_v18 = vld [vmem:[%s583_s0 + $0x24] ss:$8 sps:$4 sm:$0xff]   ;;  %v403_v20 = vld [vmem:[%s583_s0 + $0x20] ss:$8 sps:$4 sm:$0xff]   ;;  %v407_v23 = vld [vmem:[%s583_s0 + $0x74] ss:$8 sps:$4 sm:$0xff]  }
   0x8   :  { %v401_v19 = vld [vmem:[%s583_s0 + $0x64] ss:$8 sps:$4 sm:$0xff]   ;;  %v404_v21 = vld [vmem:[%s583_s0 + $0x60] ss:$8 sps:$4 sm:$0xff]   ;;  %v409_v24 = vld [vmem:[%s583_s0 + $0x30] ss:$8 sps:$4 sm:$0xff]  }
   0x9   :  { %v410_v25 = vld [vmem:[%s583_s0 + $0x70] ss:$8 sps:$4 sm:$0xff]   ;;  %v325_v26 = vld [vmem:[%s584_s2] ss:$0 sm:$0xff] }
   0xa   :  { %212 = vmatpush1.bf16.msra.mxu0 %v380_v3  ;;  %370 = vmatpush1.bf16.msra.mxu1 %v380_v3 }
   0xb   :  { %213 = vmatprep.subr.bf16.mxu0 %v411_v0  ;;  %362 = vmatprep.subr.bf16.mxu1 %v411_v0 }
   0xe   :  { %214 = vmatpush1.bf16.msra.mxu0 %v381_v4  ;;  %371 = vmatpush1.bf16.msra.mxu1 %v381_v4 }
   0xf   :  { %215 = vmatprep.subr.bf16.mxu0 %v411_v0  ;;  %363 = vmatprep.subr.bf16.mxu1 %v411_v0 }
  0x12   :  { %216 = vmatpush1.bf16.msra.mxu0 %v382_v7  ;;  %372 = vmatpush1.bf16.msra.mxu1 %v382_v7 }
  0x13   :  { %217 = vmatprep.subr.bf16.mxu0 %v411_v0  ;;  %364 = vmatprep.subr.bf16.mxu1 %v411_v0 }
  0x16   :  { %218 = vmatpush1.bf16.msra.mxu0 %v383_v8  ;;  %373 = vmatpush1.bf16.msra.mxu1 %v383_v8 }
  0x17   :  { %219 = vmatprep.subr.bf16.mxu0 %v411_v0  ;;  %365 = vmatprep.subr.bf16.mxu1 %v411_v0 }
  0x1a   :  { %220 = vmatpush1.bf16.msra.mxu0 %v384_v9  ;;  %374 = vmatpush1.bf16.msra.mxu1 %v384_v9 }
  0x1b   :  { %221 = vmatprep.subr.bf16.mxu0 %v411_v0  ;;  %366 = vmatprep.subr.bf16.mxu1 %v411_v0 }
  0x1e   :  { %222 = vmatpush1.bf16.msra.mxu0 %v385_v10  ;;  %375 = vmatpush1.bf16.msra.mxu1 %v385_v10 }
  0x1f   :  { %237 = vmatprep.subr.bf16.mxu0 %v411_v0  ;;  %367 = vmatprep.subr.bf16.mxu1 %v411_v0 }
  0x22   :  { %238 = vmatpush2.bf16.msra.mxu0 %v386_v11  ;;  %376 = vmatpush2.bf16.msra.mxu1 %v386_v11 }
  0x25   :  { %240 = vmatmul.mubr.bf16.vlgmr.msra.gmra.mxu0 %v387_v12  ;;  %272 = vmatmul.mubr.bf16.vlgmr.msra.gmra.mxu1 %v390_v13 }
  0x26   :  { %352 = vmatprep.mubr.msk.bf16.mxu0 %vm182_vm0, %v393_v14  ;;  %356 = vmatprep.mubr.msk.bf16.mxu1 %vm182_vm0, %v395_v15 }
  0x2d   :  { %248 = vmatmul.mubr.bf16.gmra.mxu0 %v397_v16  ;;  %280 = vmatmul.mubr.bf16.gmra.mxu1 %v398_v17 }
  0x2e   :  { %353 = vmatprep.mubr.msk.bf16.mxu0 %vm182_vm0, %v399_v18  ;;  %357 = vmatprep.mubr.msk.bf16.mxu1 %vm182_vm0, %v401_v19 }
  0x35   :  { %256 = vmatmul.mubr.bf16.gmra.mxu0 %v403_v20  ;;  %288 = vmatmul.mubr.bf16.gmra.mxu1 %v404_v21 }
  0x36   :  { %354 = vmatprep.mubr.msk.bf16.mxu0 %vm182_vm0, %v405_v22  ;;  %358 = vmatprep.mubr.msk.bf16.mxu1 %vm182_vm0, %v407_v23 }
  0x3d   :  { %264 = vmatmul.mubr.bf16.gmra.mxu0 %v409_v24  ;;  %296 = vmatmul.mubr.bf16.gmra.mxu1 %v410_v25 }
  0xe5   :  { %v241_v27 = vpop.f32.mrf.mxu0  ;;  %v273_v28 = vpop.f32.mrf.mxu1 }
  0xe6   :  { %v242_v29 = vadd.f32 %v325_v26, %v241_v27  ;;  %v274_v30 = vadd.f32 %v325_v26, %v273_v28 }
  0xe7   :  { %v243_v31 = vpop.f32.mrf.mxu0  ;;  %v275_v32 = vpop.f32.mrf.mxu1 }
  0xe8   :  { %305 = vst.msk [vmem:[%s585_s3] sm:$0xff] %vm304_vm1, %v242_v29  ;;  %313 = vst.msk [vmem:[%s585_s3 + $0x40] sm:$0xff] %vm304_vm1, %v274_v30 }
  0xe9   :  { %v244_v33 = vpop.f32.mrf.mxu0  ;;  %v276_v34 = vpop.f32.mrf.mxu1 }
  0xea   :  { %v245_v35 = vadd.f32 %v325_v26, %v244_v33  ;;  %v277_v36 = vadd.f32 %v325_v26, %v276_v34 }
  0xeb   :  { %v246_v37 = vpop.f32.mrf.mxu0  ;;  %v278_v38 = vpop.f32.mrf.mxu1 }
  0xec   :  { %306 = vst.msk [vmem:[%s585_s3 + $0x8] sm:$0xff] %vm304_vm1, %v245_v35  ;;  %314 = vst.msk [vmem:[%s585_s3 + $0x48] sm:$0xff] %vm304_vm1, %v277_v36 }
  0xed   :  { %v249_v39 = vpop.f32.mrf.mxu0  ;;  %v281_v40 = vpop.f32.mrf.mxu1 }
  0xee   :  { %v250_v41 = vadd.f32 %v325_v26, %v249_v39  ;;  %v282_v42 = vadd.f32 %v325_v26, %v281_v40 }
  0xef   :  { %v251_v43 = vpop.f32.mrf.mxu0  ;;  %v283_v44 = vpop.f32.mrf.mxu1 }
  0xf0   :  { %307 = vst.msk [vmem:[%s585_s3 + $0x10] sm:$0xff] %vm304_vm1, %v250_v41  ;;  %315 = vst.msk [vmem:[%s585_s3 + $0x50] sm:$0xff] %vm304_vm1, %v282_v42 }
  0xf1   :  { %v252_v45 = vpop.f32.mrf.mxu0  ;;  %v284_v46 = vpop.f32.mrf.mxu1 }
  0xf2   :  { %v253_v47 = vadd.f32 %v325_v26, %v252_v45  ;;  %v285_v48 = vadd.f32 %v325_v26, %v284_v46 }
  0xf3   :  { %v254_v49 = vpop.f32.mrf.mxu0  ;;  %v286_v50 = vpop.f32.mrf.mxu1 }
  0xf4   :  { %308 = vst.msk [vmem:[%s585_s3 + $0x18] sm:$0xff] %vm304_vm1, %v253_v47  ;;  %316 = vst.msk [vmem:[%s585_s3 + $0x58] sm:$0xff] %vm304_vm1, %v285_v48 }
  0xf5   :  { %v257_v51 = vpop.f32.mrf.mxu0  ;;  %v289_v52 = vpop.f32.mrf.mxu1 }
  0xf6   :  { %v258_v53 = vadd.f32 %v325_v26, %v257_v51  ;;  %v290_v54 = vadd.f32 %v325_v26, %v289_v52 }
  0xf7   :  { %v259_v55 = vpop.f32.mrf.mxu0  ;;  %v291_v56 = vpop.f32.mrf.mxu1 }
  0xf8   :  { %309 = vst.msk [vmem:[%s585_s3 + $0x20] sm:$0xff] %vm304_vm1, %v258_v53  ;;  %317 = vst.msk [vmem:[%s585_s3 + $0x60] sm:$0xff] %vm304_vm1, %v290_v54 }
  0xf9   :  { %v260_v57 = vpop.f32.mrf.mxu0  ;;  %v292_v58 = vpop.f32.mrf.mxu1 }
  0xfa   :  { %v261_v59 = vadd.f32 %v325_v26, %v260_v57  ;;  %v293_v60 = vadd.f32 %v325_v26, %v292_v58 }
  0xfb   :  { %v262_v61 = vpop.f32.mrf.mxu0  ;;  %v294_v62 = vpop.f32.mrf.mxu1 }
  0xfc   :  { %310 = vst.msk [vmem:[%s585_s3 + $0x28] sm:$0xff] %vm304_vm1, %v261_v59  ;;  %318 = vst.msk [vmem:[%s585_s3 + $0x68] sm:$0xff] %vm304_vm1, %v293_v60 }
  0xfd   :  { %v265_v63 = vpop.f32.mrf.mxu0  ;;  %v297_v0 = vpop.f32.mrf.mxu1 }
  0xfe   :  { %v266_v1 = vadd.f32 %v325_v26, %v265_v63  ;;  %v298_v2 = vadd.f32 %v325_v26, %v297_v0 }
  0xff   :  { %v267_v3 = vpop.f32.mrf.mxu0  ;;  %v299_v4 = vpop.f32.mrf.mxu1 }
 0x100   :  { %311 = vst.msk [vmem:[%s585_s3 + $0x30] sm:$0xff] %vm304_vm1, %v266_v1  ;;  %319 = vst.msk [vmem:[%s585_s3 + $0x70] sm:$0xff] %vm304_vm1, %v298_v2 }
 0x101   :  { %v268_v5 = vpop.f32.mrf.mxu0  ;;  %v300_v6 = vpop.f32.mrf.mxu1 }
 0x102   :  { %v269_v7 = vadd.f32 %v325_v26, %v268_v5  ;;  %v301_v8 = vadd.f32 %v325_v26, %v300_v6 }
 0x103   :  { %v270_v9 = vpop.f32.mrf.mxu0  ;;  %v302_v10 = vpop.f32.mrf.mxu1 }
 0x104   :  { %312 = vst.msk [vmem:[%s585_s3 + $0x38] sm:$0xff] %vm304_vm1, %v269_v7  ;;  %320 = vst.msk [vmem:[%s585_s3 + $0x78] sm:$0xff] %vm304_vm1, %v301_v8 }

</bundles_post_ra>
